<compile_context>
chip_gen: v6e
topology: v6e:2x2x1
jax: 0.10.0
libtpu: 0.0.40
codegen_flags: <defaults>
</compile_context>

<pallas_src>
import functools

import jax
import jax.numpy as jnp
from jax.experimental import pallas as pl
from jax.experimental.pallas import tpu as pltpu


_LANE = 128
_SUBLANE = 8
_VMEM_BLOCK_BUDGET = 16 * 1024 * 1024        # per-step working-set target (bytes)


def _round_up(x, m):
    return (x + m - 1) // m * m


def _num_tensorcores():
    """Best-effort TensorCores-per-chip (v7x has 2; v5e/v6e have 1)."""
    try:
        kind = (jax.devices()[0].device_kind or "").lower()
        if "v7" in kind:
            return 2
    except Exception:
        pass
    return 1


# --------------------------------------------------------------------------- #
# Kernels
# --------------------------------------------------------------------------- #
def _cross_attn_kernel(x1_ref, x2_ref, wqt_ref, bq_ref, wkvt_ref, bkv_ref,
                       o_ref, *, mm_dtype):
    """General (S1 > 1) path: blocks are (TB, S1, D) / (TB, S2, D)."""
    tb, s1, d = x1_ref.shape
    s2 = x2_ref.shape[1]

    x1 = x1_ref[...]
    x2 = x2_ref[...]

    x1f = x1.reshape(tb * s1, d).astype(mm_dtype)
    x2f = x2.reshape(tb * s2, d).astype(mm_dtype)

    # Projections: weights pre-transposed to (in, out); softmax scale folded
    # into Wq/bq; K and V fused into one (D, 2D) matmul.
    q = jnp.dot(x1f, wqt_ref[...], preferred_element_type=jnp.float32) + bq_ref[...]
    kv = jnp.dot(x2f, wkvt_ref[...], preferred_element_type=jnp.float32) + bkv_ref[...]

    qb = q.reshape(tb, s1, d).astype(mm_dtype)
    kb = kv[:, :d].reshape(tb, s2, d).astype(mm_dtype)
    vb = kv[:, d:].reshape(tb, s2, d).astype(mm_dtype)

    # Scores: narrow-dtype operands, f32 accumulation, contraction on last dims.
    s = jnp.einsum("bqd,bkd->bqk", qb, kb, preferred_element_type=jnp.float32)
    s = s - jnp.max(s, axis=-1, keepdims=True)
    p = jnp.exp(s)
    p = p * pl.reciprocal(jnp.sum(p, axis=-1, keepdims=True), approx=True)

    out = jnp.einsum("bqk,bkd->bqd", p.astype(mm_dtype), vb,
                     preferred_element_type=jnp.float32)
    # TODO(synk): for very long S2, add a KV grid axis with online softmax so
    # the (TB, S1, S2) score tensor is never materialized.
    o_ref[...] = out.astype(o_ref.dtype)


def _cross_attn_decode_kernel(x1_ref, x2_ref, wqt_ref, bq_ref, wkvt_ref,
                              bkv_ref, o_ref, *, mm_dtype):
    """S1 == 1 (residual) path with packed (TB, D) batch rows.

    Scores / weighted sum run on the VPU+XLU so each vreg carries 8 batch rows
    instead of issuing 1-row batched MXU matmuls.
    """
    tb, d = x1_ref.shape
    s2 = x2_ref.shape[1]

    x1 = x1_ref[...]                                     # (TB, D)
    x2 = x2_ref[...]                                     # (TB, S2, D)

    q = jnp.dot(x1.astype(mm_dtype), wqt_ref[...],
                preferred_element_type=jnp.float32) + bq_ref[...]        # (TB, D)
    kv = jnp.dot(x2.reshape(tb * s2, d).astype(mm_dtype), wkvt_ref[...],
                 preferred_element_type=jnp.float32) + bkv_ref[...]      # (TB*S2, 2D)
    k = kv[:, :d].reshape(tb, s2, d)
    v = kv[:, d:].reshape(tb, s2, d)

    # (TB, S2) scores on the VPU (1/sqrt(D) already folded into q).
    s = jnp.sum(q[:, None, :] * k, axis=-1)
    s = s - jnp.max(s, axis=-1, keepdims=True)
    p = jnp.exp(s)
    p = p * pl.reciprocal(jnp.sum(p, axis=-1, keepdims=True), approx=True)

    out = jnp.sum(p[:, :, None] * v, axis=1)             # (TB, D)
    out = out + x1.astype(jnp.float32)                    # residual
    o_ref[...] = out.astype(o_ref.dtype)


# --------------------------------------------------------------------------- #
# Block / VMEM sizing
# --------------------------------------------------------------------------- #
def _weight_bytes(dp, w_bytes, bufs=2):
    # Wq (dp, dp) + fused Wkv (dp, 2dp) + biases, per pipeline buffer.
    return bufs * ((3 * dp * dp) * w_bytes + 3 * dp * 4)


def _per_batch_bytes(s1, s2, dp, in_bytes, out_bytes):
    blocks = 2 * (s1 + s2) * dp * in_bytes + 2 * s1 * dp * out_bytes   # dbl-buffered I/O
    interm = (s1 + 2 * s2) * dp * (4 + 2)        # f32 q/kv + matmul-dtype copies
    interm += s1 * s2 * 10                       # scores + probs (f32) + narrow probs
    return blocks + interm


def _pick_batch_block(B, per_b, fixed, *, align, n_cores):
    """Return (padded_B, TB) with TB | padded_B and (TB % align == 0 or TB == padded_B)."""
    cap = max(1, int((_VMEM_BLOCK_BUDGET - fixed) // max(per_b, 1)))
    if n_cores > 1:                               # keep >= n_cores grid steps (v7x megacore)
        cap = min(cap, max(1, B // n_cores))
    if B <= cap:
        return B, B                               # single step; full-dim block needs no align
    if align > 1:
        bp = _round_up(B, align)
        tb = align
        t = 2 * align
        while t <= min(cap, bp):
            if bp % t == 0:
                tb = t
            t += align
        return bp, tb
    tb = 1
    for t in range(2, min(B, cap) + 1):
        if B % t == 0:
            tb = t
    return B, tb


# --------------------------------------------------------------------------- #
# Wrapper
# --------------------------------------------------------------------------- #
def cross_attention(x1, x2, wq, bq, wk, bk, wv, bv, *, matmul_dtype=jnp.bfloat16):
    """Pallas TPU implementation of CrossAttention.forward.

    x1: (B, S1, D) or (B, D); x2: (B, S2, D) or (B, D).  Weights are
    PyTorch-style (out_features, in_features).  Returns (B, D) with a residual
    add when S1 == 1 (matching the PyTorch module), otherwise (B, S1, D).

    matmul_dtype defaults to bf16 (f32 accumulation); pass jnp.float32 / None
    for full-precision matmuls.
    """
    if x1.ndim == 2:
        x1 = x1[:, None, :]
    if x2.ndim == 2:
        x2 = x2[:, None, :]

    B, S1, D = x1.shape
    B2, S2, D2 = x2.shape
    assert B == B2 and D == D2, "x1/x2 must share batch and feature dims"

    out_dtype = x1.dtype
    scale = float(D) ** -0.5
    decode = (S1 == 1)
    mm_dtype = jnp.dtype(matmul_dtype) if matmul_dtype is not None else jnp.dtype(x1.dtype)

    # ---- one-time wrapper-side prep (XLA): transpose weights to (in, out),
    # fold the softmax scale into Wq/bq, fuse K/V, zero-pad D to a lane-dense
    # multiple of 128. --------------------------------------------------------
    Dp = max(_LANE, _round_up(D, _LANE))
    pad_d = Dp - D

    def prep_w(w, s=1.0):
        wt = w.T * s                               # (in, out)
        if pad_d:
            wt = jnp.pad(wt, ((0, pad_d), (0, pad_d)))
        return wt.astype(mm_dtype)

    def prep_b(b, s=1.0):
        bb = b * s
        if pad_d:
            bb = jnp.pad(bb, (0, pad_d))
        return bb.reshape(1, Dp).astype(jnp.float32)

    wq_t = prep_w(wq, scale)
    wkv_t = jnp.concatenate([prep_w(wk), prep_w(wv)], axis=1)       # (Dp, 2Dp)
    bq2 = prep_b(bq, scale)
    bkv2 = jnp.concatenate([prep_b(bk), prep_b(bv)], axis=1)        # (1, 2Dp)

    if pad_d:
        x1 = jnp.pad(x1, ((0, 0), (0, 0), (0, pad_d)))
        x2 = jnp.pad(x2, ((0, 0), (0, 0), (0, pad_d)))

    in_bytes = jnp.dtype(x1.dtype).itemsize
    out_bytes = jnp.dtype(out_dtype).itemsize
    w_bytes = jnp.dtype(mm_dtype).itemsize
    n_cores = _num_tensorcores()

    fixed = _weight_bytes(Dp, w_bytes)
    per_b = _per_batch_bytes(1 if decode else S1, S2, Dp, in_bytes, out_bytes)
    align = _SUBLANE if decode else 1
    Bp, TB = _pick_batch_block(B, per_b, fixed, align=align, n_cores=n_cores)

    if Bp != B:
        x1 = jnp.pad(x1, ((0, Bp - B), (0, 0), (0, 0)))
        x2 = jnp.pad(x2, ((0, Bp - B), (0, 0), (0, 0)))

    grid = (Bp // TB,)

    need = fixed + TB * per_b
    vmem_limit = int(min(max(2 * need, 32 * 1024 * 1024), 48 * 1024 * 1024))
    compiler_params = pltpu.CompilerParams(
        dimension_semantics=("parallel",), vmem_limit_bytes=vmem_limit)

    # Advisory cost hint so XLA schedules the weight prep around the kernel.
    flops = 2 * B * (S1 + 2 * S2) * D * D + 4 * B * S1 * S2 * D
    cost = pl.CostEstimate(
        flops=int(flops),
        transcendentals=int(B * S1 * S2),
        bytes_accessed=int((x1.size + x2.size) * in_bytes
                           + Bp * S1 * Dp * out_bytes + 3 * Dp * Dp * w_bytes))

    def make_call(weight_mode):
        def wspec(shape):
            if weight_mode is None:
                return pl.BlockSpec(shape, lambda b: (0,) * len(shape))
            return pl.BlockSpec(shape, lambda b: (0,) * len(shape),
                                pipeline_mode=weight_mode)

        weight_specs = [
            wspec((Dp, Dp)),          # Wq^T (scaled)
            wspec((1, Dp)),           # bq   (scaled)
            wspec((Dp, 2 * Dp)),      # [Wk^T | Wv^T]
            wspec((1, 2 * Dp)),       # [bk | bv]
        ]

        if decode:
            kernel = functools.partial(_cross_attn_decode_kernel, mm_dtype=mm_dtype)
            in_specs = [
                pl.BlockSpec((TB, Dp), lambda b: (b, 0)),            # x1 (packed rows)
                pl.BlockSpec((TB, S2, Dp), lambda b: (b, 0, 0)),     # x2
            ] + weight_specs
            out_spec = pl.BlockSpec((TB, Dp), lambda b: (b, 0))
            out_shape = jax.ShapeDtypeStruct((Bp, Dp), out_dtype)
            args = (x1[:, 0, :], x2, wq_t, bq2, wkv_t, bkv2)
        else:
            kernel = functools.partial(_cross_attn_kernel, mm_dtype=mm_dtype)
            in_specs = [
                pl.BlockSpec((TB, S1, Dp), lambda b: (b, 0, 0)),     # x1
                pl.BlockSpec((TB, S2, Dp), lambda b: (b, 0, 0)),     # x2
            ] + weight_specs
            out_spec = pl.BlockSpec((TB, S1, Dp), lambda b: (b, 0, 0))
            out_shape = jax.ShapeDtypeStruct((Bp, S1, Dp), out_dtype)
            args = (x1, x2, wq_t, bq2, wkv_t, bkv2)

        call = pl.pallas_call(
            kernel,
            out_shape=out_shape,
            grid_spec=pltpu.PrefetchScalarGridSpec(
                num_scalar_prefetch=0,
                grid=grid,
                in_specs=in_specs,
                out_specs=out_spec),
            compiler_params=compiler_params,
            cost_estimate=cost,
        )
        return call(*args)

    # Constant-index weight blocks only need one pipeline buffer; fall back to
    # default double-buffering if this JAX/Mosaic version rejects Buffered(1).
    buffered = getattr(pl, "Buffered", None)
    try:
        out = make_call(buffered(1) if buffered is not None else None)
    except Exception:
        out = make_call(None)

    if decode:
        return out[:B, :D]
    return out[:, :, :D] if pad_d else out


def _reference(x1, x2, wq, bq, wk, bk, wv, bv):
    """Pure-JAX reference mirroring the PyTorch forward."""
    if x1.ndim == 2:
        x1 = x1[:, None, :]
    if x2.ndim == 2:
        x2 = x2[:, None, :]
    D = x1.shape[-1]
    q = jnp.einsum("bsd,ed->bse", x1, wq) + bq
    k = jnp.einsum("bsd,ed->bse", x2, wk) + bk
    v = jnp.einsum("bsd,ed->bse", x2, wv) + bv
    attn = jnp.einsum("bqd,bkd->bqk", q, k) * (D ** -0.5)
    attn = jax.nn.softmax(attn, axis=-1)
    out = jnp.einsum("bqk,bkd->bqd", attn, v)
    if x1.shape[1] == 1:
        return out[:, 0, :] + x1[:, 0, :]
    return out


if __name__ == "__main__":
    key = jax.random.PRNGKey(0)
    B, S1, S2, D = 2, 8, 8, 32

    k1, k2, k3, k4, k5, k6, k7, k8 = jax.random.split(key, 8)
    x1 = jax.random.normal(k1, (B, S1, D), dtype=jnp.float32)
    x2 = jax.random.normal(k2, (B, S2, D), dtype=jnp.float32)

    wq = jax.random.normal(k3, (D, D), dtype=jnp.float32) * 0.1
    bq = jax.random.normal(k4, (D,), dtype=jnp.float32) * 0.1
    wk = jax.random.normal(k5, (D, D), dtype=jnp.float32) * 0.1
    bk = jax.random.normal(k6, (D,), dtype=jnp.float32) * 0.1
    wv = jax.random.normal(k7, (D, D), dtype=jnp.float32) * 0.1
    bv = jax.random.normal(k8, (D,), dtype=jnp.float32) * 0.1
    params = (wq, bq, wk, bk, wv, bv)

    # 3-D path (no residual), default bf16 MXU operands.
    out3 = cross_attention(x1, x2, *params)
    jax.block_until_ready(out3)
    ref3 = _reference(x1, x2, *params)
    assert out3.shape == (B, S1, D)
    assert jnp.allclose(out3, ref3, atol=1e-2, rtol=1e-2), \
        float(jnp.max(jnp.abs(out3 - ref3)))

    # 3-D path, full f32 matmuls (tighter tolerance).
    out3f = cross_attention(x1, x2, *params, matmul_dtype=jnp.float32)
    jax.block_until_ready(out3f)
    assert jnp.allclose(out3f, ref3, atol=5e-3, rtol=5e-3), \
        float(jnp.max(jnp.abs(out3f - ref3)))

    # 2-D path (residual add, packed decode kernel, out shape (B, D)).
    x1_2d = x1[:, 0, :]
    x2_2d = x2[:, 0, :]
    out2 = cross_attention(x1_2d, x2_2d, *params)
    jax.block_until_ready(out2)
    ref2 = _reference(x1_2d, x2_2d, *params)
    assert out2.shape == (B, D)
    assert jnp.allclose(out2, ref2, atol=1e-2, rtol=1e-2), \
        float(jnp.max(jnp.abs(out2 - ref2)))

    # Mixed: 2-D query (S1 == 1, residual) attending over 3-D x2 (S2 = 8).
    outm = cross_attention(x1_2d, x2, *params)
    jax.block_until_ready(outm)
    refm = _reference(x1_2d, x2, *params)
    assert outm.shape == (B, D)
    assert jnp.allclose(outm, refm, atol=1e-2, rtol=1e-2), \
        float(jnp.max(jnp.abs(outm - refm)))

    print("KERNEL_OK")
</pallas_src>

<mosaic_0001>
module attributes {stable_mosaic.version = 11 : i64} {
  func.func @_cross_attn_kernel(%arg0: i32, %arg1: memref<2x8x128xf32, #tpu.memory_space<vmem>>, %arg2: memref<2x8x128xf32, #tpu.memory_space<vmem>>, %arg3: memref<128x128xbf16, #tpu.memory_space<vmem>>, %arg4: memref<1x128xf32, #tpu.memory_space<vmem>>, %arg5: memref<128x256xbf16, #tpu.memory_space<vmem>>, %arg6: memref<1x256xf32, #tpu.memory_space<vmem>>, %arg7: memref<2x8x128xf32, #tpu.memory_space<vmem>>) attributes {dimension_semantics = [#tpu.dimension_semantics<parallel>], iteration_bounds = array<i64: 1>, scalar_prefetch = 0 : i64, scratch_operands = 0 : i64, tpu.core_type = #tpu.core_type<tc>, window_params = [{transform_indices = @transform_0, window_bounds = array<i64: 2, 8, 128>}, {transform_indices = @transform_1, window_bounds = array<i64: 2, 8, 128>}, {pipeline_mode = #tpu.pipeline_mode<synchronous>, transform_indices = @transform_2, window_bounds = array<i64: 128, 128>}, {pipeline_mode = #tpu.pipeline_mode<synchronous>, transform_indices = @transform_3, window_bounds = array<i64: 1, 128>}, {pipeline_mode = #tpu.pipeline_mode<synchronous>, transform_indices = @transform_4, window_bounds = array<i64: 128, 256>}, {pipeline_mode = #tpu.pipeline_mode<synchronous>, transform_indices = @transform_5, window_bounds = array<i64: 1, 256>}, {transform_indices = @transform_6, window_bounds = array<i64: 2, 8, 128>}]} {
    %c0 = arith.constant 0 : index
    %c0_0 = arith.constant 0 : index
    %c0_1 = arith.constant 0 : index
    %0 = vector.load %arg1[%c0, %c0_0, %c0_1] : memref<2x8x128xf32, #tpu.memory_space<vmem>>, vector<2x8x128xf32>
    %c0_2 = arith.constant 0 : index
    %c0_3 = arith.constant 0 : index
    %c0_4 = arith.constant 0 : index
    %1 = vector.load %arg2[%c0_2, %c0_3, %c0_4] : memref<2x8x128xf32, #tpu.memory_space<vmem>>, vector<2x8x128xf32>
    %2 = vector.shape_cast %0 : vector<2x8x128xf32> to vector<16x128xf32>
    %3 = arith.truncf %2 : vector<16x128xf32> to vector<16x128xbf16>
    %4 = vector.shape_cast %1 : vector<2x8x128xf32> to vector<16x128xf32>
    %5 = arith.truncf %4 : vector<16x128xf32> to vector<16x128xbf16>
    %c0_5 = arith.constant 0 : index
    %c0_6 = arith.constant 0 : index
    %6 = vector.load %arg3[%c0_5, %c0_6] : memref<128x128xbf16, #tpu.memory_space<vmem>>, vector<128x128xbf16>
    %cst = arith.constant dense<0.000000e+00> : vector<16x128xf32>
    %7 = tpu.matmul %3, %6, %cst {dimension_numbers = #tpu.dot_dimension_numbers<[1], [0], [0], [1], [0, 0, 1, 1], [], []>} : vector<16x128xbf16>, vector<128x128xbf16>, vector<16x128xf32> -> vector<16x128xf32>
    %c0_7 = arith.constant 0 : index
    %c0_8 = arith.constant 0 : index
    %8 = vector.load %arg4[%c0_7, %c0_8] : memref<1x128xf32, #tpu.memory_space<vmem>>, vector<1x128xf32>
    %9 = vector.broadcast %8 : vector<1x128xf32> to vector<16x128xf32>
    %10 = arith.addf %7, %9 : vector<16x128xf32>
    %c0_9 = arith.constant 0 : index
    %c0_10 = arith.constant 0 : index
    %11 = vector.load %arg5[%c0_9, %c0_10] : memref<128x256xbf16, #tpu.memory_space<vmem>>, vector<128x256xbf16>
    %cst_11 = arith.constant dense<0.000000e+00> : vector<16x256xf32>
    %12 = tpu.matmul %5, %11, %cst_11 {dimension_numbers = #tpu.dot_dimension_numbers<[1], [0], [0], [1], [0, 0, 1, 1], [], []>} : vector<16x128xbf16>, vector<128x256xbf16>, vector<16x256xf32> -> vector<16x256xf32>
    %c0_12 = arith.constant 0 : index
    %c0_13 = arith.constant 0 : index
    %13 = vector.load %arg6[%c0_12, %c0_13] : memref<1x256xf32, #tpu.memory_space<vmem>>, vector<1x256xf32>
    %14 = vector.broadcast %13 : vector<1x256xf32> to vector<16x256xf32>
    %15 = arith.addf %12, %14 : vector<16x256xf32>
    %16 = vector.shape_cast %10 : vector<16x128xf32> to vector<2x8x128xf32>
    %17 = arith.truncf %16 : vector<2x8x128xf32> to vector<2x8x128xbf16>
    %18 = vector.extract_strided_slice %15 {offsets = [0, 0], sizes = [16, 128], strides = [1, 1]} : vector<16x256xf32> to vector<16x128xf32>
    %19 = vector.shape_cast %18 : vector<16x128xf32> to vector<2x8x128xf32>
    %20 = arith.truncf %19 : vector<2x8x128xf32> to vector<2x8x128xbf16>
    %21 = vector.extract_strided_slice %15 {offsets = [0, 128], sizes = [16, 128], strides = [1, 1]} : vector<16x256xf32> to vector<16x128xf32>
    %22 = vector.shape_cast %21 : vector<16x128xf32> to vector<2x8x128xf32>
    %23 = arith.truncf %22 : vector<2x8x128xf32> to vector<2x8x128xbf16>
    "tpu.trace_start"() <{level = 10 : i32, message = "bqd,bkd->bqk"}> : () -> ()
    %cst_14 = arith.constant dense<0.000000e+00> : vector<2x8x8xf32>
    %24 = tpu.matmul %17, %20, %cst_14 {dimension_numbers = #tpu.dot_dimension_numbers<[2], [2], [1], [1], [0, 0, 0, 1, 1, 1], [0], [0]>} : vector<2x8x128xbf16>, vector<2x8x128xbf16>, vector<2x8x8xf32> -> vector<2x8x8xf32>
    "tpu.trace_stop"() : () -> ()
    %cst_15 = arith.constant dense<0xFF800000> : vector<2x8xf32>
    %25 = vector.multi_reduction <maximumf>, %24, %cst_15 [2] : vector<2x8x8xf32> to vector<2x8xf32>
    %26 = vector.shape_cast %25 : vector<2x8xf32> to vector<2x8x1xf32>
    %27 = vector.broadcast %26 : vector<2x8x1xf32> to vector<2x8x8xf32>
    %28 = arith.subf %24, %27 : vector<2x8x8xf32>
    %29 = math.exp %28 : vector<2x8x8xf32>
    %cst_16 = arith.constant dense<0.000000e+00> : vector<2x8xf32>
    %30 = vector.multi_reduction <add>, %29, %cst_16 [2] : vector<2x8x8xf32> to vector<2x8xf32>
    %31 = vector.shape_cast %30 : vector<2x8xf32> to vector<2x8x1xf32>
    %32 = tpu.reciprocal %31 {approx = true} : vector<2x8x1xf32> -> vector<2x8x1xf32>
    %33 = vector.broadcast %32 : vector<2x8x1xf32> to vector<2x8x8xf32>
    %34 = arith.mulf %29, %33 : vector<2x8x8xf32>
    %35 = arith.truncf %34 : vector<2x8x8xf32> to vector<2x8x8xbf16>
    "tpu.trace_start"() <{level = 10 : i32, message = "bqk,bkd->bqd"}> : () -> ()
    %cst_17 = arith.constant dense<0.000000e+00> : vector<2x8x128xf32>
    %36 = tpu.matmul %35, %23, %cst_17 {dimension_numbers = #tpu.dot_dimension_numbers<[2], [1], [1], [2], [0, 0, 0, 1, 1, 2], [0], [0]>} : vector<2x8x8xbf16>, vector<2x8x128xbf16>, vector<2x8x128xf32> -> vector<2x8x128xf32>
    "tpu.trace_stop"() : () -> ()
    %c0_18 = arith.constant 0 : index
    %c0_19 = arith.constant 0 : index
    %c0_20 = arith.constant 0 : index
    %37 = vector.load %arg7[%c0_18, %c0_19, %c0_20] : memref<2x8x128xf32, #tpu.memory_space<vmem>>, vector<2x8x128xf32>
    tpu.vector_store %arg7[%c0_18, %c0_19, %c0_20], %36 {strides = array<i32>} : memref<2x8x128xf32, #tpu.memory_space<vmem>>, vector<2x8x128xf32>,
    return
  }
  func.func @transform_0(%arg0: i32) -> (i32, i32, i32) {
    %c0_i32 = arith.constant 0 : i32
    %c0_i32_0 = arith.constant 0 : i32
    %c0_i32_1 = arith.constant 0 : i32
    return %arg0, %c0_i32, %c0_i32_0 : i32, i32, i32
  }
  func.func @transform_1(%arg0: i32) -> (i32, i32, i32) {
    %c0_i32 = arith.constant 0 : i32
    %c0_i32_0 = arith.constant 0 : i32
    %c0_i32_1 = arith.constant 0 : i32
    return %arg0, %c0_i32, %c0_i32_0 : i32, i32, i32
  }
  func.func @transform_2(%arg0: i32) -> (i32, i32) {
    %c0_i32 = arith.constant 0 : i32
    %c0_i32_0 = arith.constant 0 : i32
    %c0_i32_1 = arith.constant 0 : i32
    return %c0_i32, %c0_i32_0 : i32, i32
  }
  func.func @transform_3(%arg0: i32) -> (i32, i32) {
    %c0_i32 = arith.constant 0 : i32
    %c0_i32_0 = arith.constant 0 : i32
    %c0_i32_1 = arith.constant 0 : i32
    return %c0_i32, %c0_i32_0 : i32, i32
  }
  func.func @transform_4(%arg0: i32) -> (i32, i32) {
    %c0_i32 = arith.constant 0 : i32
    %c0_i32_0 = arith.constant 0 : i32
    %c0_i32_1 = arith.constant 0 : i32
    return %c0_i32, %c0_i32_0 : i32, i32
  }
  func.func @transform_5(%arg0: i32) -> (i32, i32) {
    %c0_i32 = arith.constant 0 : i32
    %c0_i32_0 = arith.constant 0 : i32
    %c0_i32_1 = arith.constant 0 : i32
    return %c0_i32, %c0_i32_0 : i32, i32
  }
  func.func @transform_6(%arg0: i32) -> (i32, i32, i32) {
    %c0_i32 = arith.constant 0 : i32
    %c0_i32_0 = arith.constant 0 : i32
    %c0_i32_1 = arith.constant 0 : i32
    return %arg0, %c0_i32, %c0_i32_0 : i32, i32, i32
  }
}

module attributes {stable_mosaic.version = 11 : i64} {
  func.func @_cross_attn_kernel(%arg0: i32, %arg1: memref<2x8x128xf32, #tpu.memory_space<vmem>>, %arg2: memref<2x8x128xf32, #tpu.memory_space<vmem>>, %arg3: memref<128x128xbf16, #tpu.memory_space<vmem>>, %arg4: memref<1x128xf32, #tpu.memory_space<vmem>>, %arg5: memref<128x256xbf16, #tpu.memory_space<vmem>>, %arg6: memref<1x256xf32, #tpu.memory_space<vmem>>, %arg7: memref<2x8x128xf32, #tpu.memory_space<vmem>>) attributes {dimension_semantics = [#tpu.dimension_semantics<parallel>], iteration_bounds = array<i64: 1>, scalar_prefetch = 0 : i64, scratch_operands = 0 : i64, tpu.core_type = #tpu.core_type<tc>, window_params = [{transform_indices = @transform_0, window_bounds = array<i64: 2, 8, 128>}, {transform_indices = @transform_1, window_bounds = array<i64: 2, 8, 128>}, {pipeline_mode = #tpu.pipeline_mode<synchronous>, transform_indices = @transform_2, window_bounds = array<i64: 128, 128>}, {pipeline_mode = #tpu.pipeline_mode<synchronous>, transform_indices = @transform_3, window_bounds = array<i64: 1, 128>}, {pipeline_mode = #tpu.pipeline_mode<synchronous>, transform_indices = @transform_4, window_bounds = array<i64: 128, 256>}, {pipeline_mode = #tpu.pipeline_mode<synchronous>, transform_indices = @transform_5, window_bounds = array<i64: 1, 256>}, {transform_indices = @transform_6, window_bounds = array<i64: 2, 8, 128>}]} {
    %c0 = arith.constant 0 : index
    %c0_0 = arith.constant 0 : index
    %c0_1 = arith.constant 0 : index
    %0 = vector.load %arg1[%c0, %c0_0, %c0_1] : memref<2x8x128xf32, #tpu.memory_space<vmem>>, vector<2x8x128xf32>
    %c0_2 = arith.constant 0 : index
    %c0_3 = arith.constant 0 : index
    %c0_4 = arith.constant 0 : index
    %1 = vector.load %arg2[%c0_2, %c0_3, %c0_4] : memref<2x8x128xf32, #tpu.memory_space<vmem>>, vector<2x8x128xf32>
    %2 = vector.shape_cast %0 : vector<2x8x128xf32> to vector<16x128xf32>
    %3 = arith.truncf %2 : vector<16x128xf32> to vector<16x128xbf16>
    %4 = vector.shape_cast %1 : vector<2x8x128xf32> to vector<16x128xf32>
    %5 = arith.truncf %4 : vector<16x128xf32> to vector<16x128xbf16>
    %c0_5 = arith.constant 0 : index
    %c0_6 = arith.constant 0 : index
    %6 = vector.load %arg3[%c0_5, %c0_6] : memref<128x128xbf16, #tpu.memory_space<vmem>>, vector<128x128xbf16>
    %cst = arith.constant dense<0.000000e+00> : vector<16x128xf32>
    %7 = tpu.matmul %3, %6, %cst {dimension_numbers = #tpu.dot_dimension_numbers<[1], [0], [0], [1], [0, 0, 1, 1], [], []>} : vector<16x128xbf16>, vector<128x128xbf16>, vector<16x128xf32> -> vector<16x128xf32>
    %c0_7 = arith.constant 0 : index
    %c0_8 = arith.constant 0 : index
    %8 = vector.load %arg4[%c0_7, %c0_8] : memref<1x128xf32, #tpu.memory_space<vmem>>, vector<1x128xf32>
    %9 = vector.broadcast %8 : vector<1x128xf32> to vector<16x128xf32>
    %10 = arith.addf %7, %9 : vector<16x128xf32>
    %c0_9 = arith.constant 0 : index
    %c0_10 = arith.constant 0 : index
    %11 = vector.load %arg5[%c0_9, %c0_10] : memref<128x256xbf16, #tpu.memory_space<vmem>>, vector<128x256xbf16>
    %cst_11 = arith.constant dense<0.000000e+00> : vector<16x256xf32>
    %12 = tpu.matmul %5, %11, %cst_11 {dimension_numbers = #tpu.dot_dimension_numbers<[1], [0], [0], [1], [0, 0, 1, 1], [], []>} : vector<16x128xbf16>, vector<128x256xbf16>, vector<16x256xf32> -> vector<16x256xf32>
    %c0_12 = arith.constant 0 : index
    %c0_13 = arith.constant 0 : index
    %13 = vector.load %arg6[%c0_12, %c0_13] : memref<1x256xf32, #tpu.memory_space<vmem>>, vector<1x256xf32>
    %14 = vector.broadcast %13 : vector<1x256xf32> to vector<16x256xf32>
    %15 = arith.addf %12, %14 : vector<16x256xf32>
    %16 = vector.shape_cast %10 : vector<16x128xf32> to vector<2x8x128xf32>
    %17 = arith.truncf %16 : vector<2x8x128xf32> to vector<2x8x128xbf16>
    %18 = vector.extract_strided_slice %15 {offsets = [0, 0], sizes = [16, 128], strides = [1, 1]} : vector<16x256xf32> to vector<16x128xf32>
    %19 = vector.shape_cast %18 : vector<16x128xf32> to vector<2x8x128xf32>
    %20 = arith.truncf %19 : vector<2x8x128xf32> to vector<2x8x128xbf16>
    %21 = vector.extract_strided_slice %15 {offsets = [0, 128], sizes = [16, 128], strides = [1, 1]} : vector<16x256xf32> to vector<16x128xf32>
    %22 = vector.shape_cast %21 : vector<16x128xf32> to vector<2x8x128xf32>
    %23 = arith.truncf %22 : vector<2x8x128xf32> to vector<2x8x128xbf16>
    "tpu.trace_start"() <{level = 10 : i32, message = "bqd,bkd->bqk"}> : () -> ()
    %cst_14 = arith.constant dense<0.000000e+00> : vector<2x8x8xf32>
    %24 = tpu.matmul %17, %20, %cst_14 {dimension_numbers = #tpu.dot_dimension_numbers<[2], [2], [1], [1], [0, 0, 0, 1, 1, 1], [0], [0]>} : vector<2x8x128xbf16>, vector<2x8x128xbf16>, vector<2x8x8xf32> -> vector<2x8x8xf32>
    "tpu.trace_stop"() : () -> ()
    %cst_15 = arith.constant dense<0xFF800000> : vector<2x8xf32>
    %25 = vector.multi_reduction <maximumf>, %24, %cst_15 [2] : vector<2x8x8xf32> to vector<2x8xf32>
    %26 = vector.shape_cast %25 : vector<2x8xf32> to vector<2x8x1xf32>
    %27 = vector.broadcast %26 : vector<2x8x1xf32> to vector<2x8x8xf32>
    %28 = arith.subf %24, %27 : vector<2x8x8xf32>
    %29 = math.exp %28 : vector<2x8x8xf32>
    %cst_16 = arith.constant dense<0.000000e+00> : vector<2x8xf32>
    %30 = vector.multi_reduction <add>, %29, %cst_16 [2] : vector<2x8x8xf32> to vector<2x8xf32>
    %31 = vector.shape_cast %30 : vector<2x8xf32> to vector<2x8x1xf32>
    %32 = tpu.reciprocal %31 {approx = true} : vector<2x8x1xf32> -> vector<2x8x1xf32>
    %33 = vector.broadcast %32 : vector<2x8x1xf32> to vector<2x8x8xf32>
    %34 = arith.mulf %29, %33 : vector<2x8x8xf32>
    %35 = arith.truncf %34 : vector<2x8x8xf32> to vector<2x8x8xbf16>
    "tpu.trace_start"() <{level = 10 : i32, message = "bqk,bkd->bqd"}> : () -> ()
    %cst_17 = arith.constant dense<0.000000e+00> : vector<2x8x128xf32>
    %36 = tpu.matmul %35, %23, %cst_17 {dimension_numbers = #tpu.dot_dimension_numbers<[2], [1], [1], [2], [0, 0, 0, 1, 1, 2], [0], [0]>} : vector<2x8x8xbf16>, vector<2x8x128xbf16>, vector<2x8x128xf32> -> vector<2x8x128xf32>
    "tpu.trace_stop"() : () -> ()
    %c0_18 = arith.constant 0 : index
    %c0_19 = arith.constant 0 : index
    %c0_20 = arith.constant 0 : index
    %37 = vector.load %arg7[%c0_18, %c0_19, %c0_20] : memref<2x8x128xf32, #tpu.memory_space<vmem>>, vector<2x8x128xf32>
    tpu.vector_store %arg7[%c0_18, %c0_19, %c0_20], %36 {strides = array<i32>} : memref<2x8x128xf32, #tpu.memory_space<vmem>>, vector<2x8x128xf32>,
    return
  }
  func.func @transform_0(%arg0: i32) -> (i32, i32, i32) {
    %c0_i32 = arith.constant 0 : i32
    %c0_i32_0 = arith.constant 0 : i32
    %c0_i32_1 = arith.constant 0 : i32
    return %arg0, %c0_i32, %c0_i32_0 : i32, i32, i32
  }
  func.func @transform_1(%arg0: i32) -> (i32, i32, i32) {
    %c0_i32 = arith.constant 0 : i32
    %c0_i32_0 = arith.constant 0 : i32
    %c0_i32_1 = arith.constant 0 : i32
    return %arg0, %c0_i32, %c0_i32_0 : i32, i32, i32
  }
  func.func @transform_2(%arg0: i32) -> (i32, i32) {
    %c0_i32 = arith.constant 0 : i32
    %c0_i32_0 = arith.constant 0 : i32
    %c0_i32_1 = arith.constant 0 : i32
    return %c0_i32, %c0_i32_0 : i32, i32
  }
  func.func @transform_3(%arg0: i32) -> (i32, i32) {
    %c0_i32 = arith.constant 0 : i32
    %c0_i32_0 = arith.constant 0 : i32
    %c0_i32_1 = arith.constant 0 : i32
    return %c0_i32, %c0_i32_0 : i32, i32
  }
  func.func @transform_4(%arg0: i32) -> (i32, i32) {
    %c0_i32 = arith.constant 0 : i32
    %c0_i32_0 = arith.constant 0 : i32
    %c0_i32_1 = arith.constant 0 : i32
    return %c0_i32, %c0_i32_0 : i32, i32
  }
  func.func @transform_5(%arg0: i32) -> (i32, i32) {
    %c0_i32 = arith.constant 0 : i32
    %c0_i32_0 = arith.constant 0 : i32
    %c0_i32_1 = arith.constant 0 : i32
    return %c0_i32, %c0_i32_0 : i32, i32
  }
  func.func @transform_6(%arg0: i32) -> (i32, i32, i32) {
    %c0_i32 = arith.constant 0 : i32
    %c0_i32_0 = arith.constant 0 : i32
    %c0_i32_1 = arith.constant 0 : i32
    return %arg0, %c0_i32, %c0_i32_0 : i32, i32, i32
  }
}

</mosaic_0001>

<bundles_post_ra>
// kernel: tpu_custom_call.1
= control target key start
LH: loop header
LB: loop body
LE: loop exit
PB: predicated region body
PF: predicated region fallthrough
CT: control target
= control target key end

     0   :  { %11 = vsyncpa [#allocation3], 0  ;;  %s930_s0 = inlined_call_operand.hbm [shape: f32[2,8,128], index: 0, kind: input, shape index: {}]   ;;  %s931_s1 = inlined_call_operand.hbm [shape: f32[2,8,128], index: 1, kind: input, shape index: {}]   ;;  %s932_s2 = inlined_call_operand.hbm [shape: bf16[128,128], index: 2, kind: input, shape index: {}]   ;;  %s933_s3 = inlined_call_operand.vmem [shape: f32[1,128], index: 3, kind: input, shape index: {}]   ;;  %s934_s4 = inlined_call_operand.hbm [shape: bf16[128,256], index: 4, kind: input, shape index: {}]   ;;  %s935_s5 = inlined_call_operand.vmem [shape: f32[1,256], index: 5, kind: input, shape index: {}]   ;;  %s936_s6 = inlined_call_operand.hbm [shape: f32[2,8,128], index: 6, kind: output, shape index: {}]  }
   0x1   :  { %12 = vsyncpa [#allocation6], 0 }
   0x2   :  { %13 = vsyncpa [#allocation9], 0 }
   0x3   :  { %14 = vsyncpa [#allocation4], 0  ;;  %s822_s21 = smov [#allocation5]   ;;  %s823_s23 = smov [#allocation2]  }
   0x4   :  { %s32_s22 = sshll.u32 %s822_s21, 4  ;;  %s20_s24 = sshll.u32 %s823_s23, 4  ;;  %s33_s22 = int_to_ptr.vmem [resolvable:$true] %s32_s22  ;;  %s21_s24 = int_to_ptr.vmem [resolvable:$true] %s20_s24 }
   0x5   :  { %s722_s25 = scalar_lea.vmem %s33_s22, 256  ;;  %p727_p1 = scmp.lt.s32.totalorder %s33_s22, %s33_s22 }
   0x6   :  { %p723_p0 = scmp.ne.s32.totalorder %s33_s22, %s722_s25  ;;  %p728_p2 = scmp.lt.s32.totalorder %s722_s25, %s722_s25 }
   0x8   :  { %p729_p3 = por %p728_p2, %p727_p1 }
   0xa   :  { %p730_p4 = pnand %p729_p3, %p723_p0 }
   0xc   :  { %733 = shalt.err (!%p730_p4)
}
   0xd   :  { %s824_s26 = smov 128   ;;  %s825_s27 = smov 8  }
   0xe   :  { %38 = dma.hbm_to_vmem [thread:$0]  %s931_s1, 256, %s33_s22, [#allocation6], %s824_s26, %s824_s26, %s825_s27  }
   0xf   :  { %s742_s30 = scalar_lea.vmem %s21_s24, 256  ;;  %p747_p6 = scmp.lt.s32.totalorder %s21_s24, %s21_s24 }
  0x10   :  { %p743_p5 = scmp.ne.s32.totalorder %s21_s24, %s742_s30  ;;  %p748_p7 = scmp.lt.s32.totalorder %s742_s30, %s742_s30 }
  0x12   :  { %p749_p8 = por %p748_p7, %p747_p6 }
  0x14   :  { %p750_p9 = pnand %p749_p8, %p743_p5 }
  0x16   :  { %753 = shalt.err (!%p750_p9)
}
  0x17   :  { %26 = dma.hbm_to_vmem [thread:$0]  %s930_s0, 256, %s21_s24, [#allocation3], %s824_s26, %s824_s26, %s825_s27  }
  0x18   :  { %s826_s9 = smov [#allocation7]  }
  0x19   :  { %s44_s10 = sshll.u32 %s826_s9, 4  ;;  %s45_s10 = int_to_ptr.vmem [resolvable:$true] %s44_s10 }
  0x1a   :  { %s762_s11 = scalar_lea.vmem %s45_s10, 1024  ;;  %p767_p11 = scmp.lt.s32.totalorder %s45_s10, %s45_s10 }
  0x1b   :  { %p763_p10 = scmp.ne.s32.totalorder %s45_s10, %s762_s11  ;;  %p768_p12 = scmp.lt.s32.totalorder %s762_s11, %s762_s11 }
  0x1d   :  { %p769_p13 = por %p768_p12, %p767_p11 }
  0x1f   :  { %p770_p0 = pnand %p769_p13, %p763_p10 }
  0x21   :  { %773 = shalt.err (!%p770_p0)
}
  0x22   :  { %s827_s1 = smov 64   ;;  %s828_s12 = smov 4  }
  0x23   :  { %50 = dma.hbm_to_vmem [thread:$0]  %s932_s2, 1024, %s45_s10, [#allocation6], %s827_s1, %s827_s1, %s828_s12  }
  0x24   :  { %s829_s15 = smov [#allocation8]  }
  0x25   :  { %s58_s16 = sshll.u32 %s829_s15, 4  ;;  %s59_s16 = int_to_ptr.vmem [resolvable:$true] %s58_s16 }
  0x26   :  { %s782_s0 = scalar_lea.vmem %s59_s16, 2048  ;;  %p787_p2 = scmp.lt.s32.totalorder %s59_s16, %s59_s16 }
  0x27   :  { %p783_p1 = scmp.ne.s32.totalorder %s59_s16, %s782_s0  ;;  %p788_p3 = scmp.lt.s32.totalorder %s782_s0, %s782_s0 }
  0x29   :  { %p789_p4 = por %p788_p3, %p787_p2 }
  0x2b   :  { %p790_p5 = pnand %p789_p4, %p783_p1 }
  0x2d   :  { %793 = shalt.err (!%p790_p5)
}
  0x2e   :  { %64 = dma.hbm_to_vmem [thread:$0]  %s934_s4, 2048, %s59_s16, [#allocation9], %s824_s26, %s824_s26, %s825_s27  }
  0x2f   :  { %814 = dma.done.wait [#allocation3], 256  }
  0x30   :  { %815 = vsyncadd [#allocation3], 4294967040 }
  0x31   :  { %816 = dma.done.wait [#allocation6], 1280  }
  0x32   :  { %817 = vsyncadd [#allocation6], 4294966016 }
  0x33   :  { %818 = dma.done.wait [#allocation9], 2048  }
  0x34   :  { %819 = vsyncadd [#allocation9], 4294965248  ;;  %v830_v0 = vmov 0.0   ;;  %v831_v1 = vmov 0   ;;  %vm832_vm0 = vmmov 0   ;;  %v677_v4 = vld [vmem:[#allocation7 + $0x38] sm:$0xff]   ;;  %v216_v32 = vlaneseq }
  0x35   :  { %618 = vmatprep.subr.bf16.mxu0 %v830_v0  ;;  %338 = vmatprep.mubr.bf16.mxu1 %v831_v1  ;;  %v674_v2 = vld [vmem:[#allocation8 + $0x74] ss:$8 sps:$4 sm:$0xff]   ;;  %v676_v3 = vld [vmem:[#allocation8 + $0x70] ss:$8 sps:$4 sm:$0xff]   ;;  %v678_v5 = vld [vmem:[#allocation8 + $0x64] ss:$8 sps:$4 sm:$0xff]  }
  0x36   :  { %634 = vmatprep.mubr.msk.bf16.mxu0 %vm832_vm0, %v830_v0  ;;  %306 = vmatprep.subr.bf16.mxu1 %v674_v2  ;;  %v680_v6 = vld [vmem:[#allocation8 + $0x60] ss:$8 sps:$4 sm:$0xff]   ;;  %v681_v7 = vld [vmem:[#allocation7 + $0x30] sm:$0xff]   ;;  %v686_v11 = vld [vmem:[#allocation8 + $0x44] ss:$8 sps:$4 sm:$0xff]   ;;  %v217_v33 = vshrl.u32 %v216_v32, 7 }
  0x37   :  { %307 = vmatpush1.bf16.msra.mxu1 %v676_v3  ;;  %619 = vmatpush3.bf16.msra.mxu0 %v677_v4  ;;  %v682_v8 = vld [vmem:[#allocation8 + $0x54] ss:$8 sps:$4 sm:$0xff]   ;;  %v684_v9 = vld [vmem:[#allocation8 + $0x50] ss:$8 sps:$4 sm:$0xff]   ;;  %v685_v10 = vld [vmem:[#allocation7 + $0x28] sm:$0xff]   ;;  %vm463_vm1 = vcmask 1043456  }
  0x38   :  { %308 = vmatprep.subr.bf16.mxu1 %v678_v5  ;;  %620 = vmatprep.subr.bf16.mxu0 %v830_v0  ;;  %v688_v12 = vld [vmem:[#allocation8 + $0x40] ss:$8 sps:$4 sm:$0xff]   ;;  %v690_v14 = vld [vmem:[#allocation8 + $0x34] ss:$8 sps:$4 sm:$0xff]   ;;  %v692_v15 = vld [vmem:[#allocation8 + $0x30] ss:$8 sps:$4 sm:$0xff]  }
  0x39   :  { %v689_v13 = vld [vmem:[#allocation7 + $0x20] sm:$0xff]   ;;  %v693_v16 = vld [vmem:[#allocation7 + $0x18] sm:$0xff]   ;;  %v697_v19 = vld [vmem:[#allocation7 + $0x10] sm:$0xff]   ;;  %v218_v34 = vsub.s32 0, %v217_v33  ;;  %v222_v36 = vsub.s32 1, %v217_v33  ;;  %vm435_vm2 = vcmask 64512  }
  0x3a   :  { %v694_v17 = vld [vmem:[#allocation8 + $0x24] ss:$8 sps:$4 sm:$0xff]   ;;  %v696_v18 = vld [vmem:[#allocation8 + $0x20] ss:$8 sps:$4 sm:$0xff]   ;;  %v698_v20 = vld [vmem:[#allocation8 + $0x14] ss:$8 sps:$4 sm:$0xff]  }
  0x3b   :  { %309 = vmatpush1.bf16.msra.mxu1 %v680_v6  ;;  %621 = vmatpush3.bf16.msra.mxu0 %v681_v7  ;;  %v700_v21 = vld [vmem:[#allocation8 + $0x10] ss:$8 sps:$4 sm:$0xff]   ;;  %v701_v22 = vld [vmem:[#allocation7 + $0x8] sm:$0xff]   ;;  %v705_v27 = vld [vmem:[#allocation7] sm:$0xff]  }
  0x3c   :  { %310 = vmatprep.subr.bf16.mxu1 %v682_v8  ;;  %622 = vmatprep.subr.bf16.mxu0 %v830_v0  ;;  %v702_v23 = vld [vmem:[#allocation8 + $0x4] ss:$8 sps:$4 sm:$0xff]   ;;  %v704_v24 = vld [vmem:[#allocation8] ss:$8 sps:$4 sm:$0xff]   ;;  %v82_v25 = vld [vmem:[#allocation5] sm:$0xff] }
  0x3d   :  { %v83_v26 = vld [vmem:[#allocation5 + $0x8] sm:$0xff]  ;;  %v80_v28 = vld [vmem:[#allocation2] sm:$0xff]  ;;  %v81_v29 = vld [vmem:[#allocation2 + $0x8] sm:$0xff] }
  0x3e   :  { %v85_v30 = vpack.c.bf16 %v83_v26, %v82_v25  ;;  %v84_v31 = vpack.c.bf16 %v81_v29, %v80_v28  ;;  %v214_v35 = vld [vmem:[%s935_s5] sm:$0x3] }
  0x3f   :  { %311 = vmatpush1.bf16.msra.mxu1 %v684_v9  ;;  %623 = vmatpush3.bf16.msra.mxu0 %v685_v10  ;;  %v219_v37 = vrot.slane %v214_v35, %v218_v34  ;;  %v223_v39 = vrot.slane %v214_v35, %v222_v36  ;;  %v574_v41 = vld [vmem:[%s933_s3] ss:$0 sm:$0xff]  ;;  %s833_s3 = smov [#allocation10]  }
  0x40   :  { %312 = vmatprep.subr.bf16.mxu1 %v686_v11  ;;  %624 = vmatprep.subr.bf16.mxu0 %v830_v0  ;;  %s560_s5 = sshll.u32 %s833_s3, 4  ;;  %s561_s5 = int_to_ptr.vmem [resolvable:$true] %s560_s5 }
  0x41   :  { %s794_s21 = scalar_lea.vmem %s561_s5, 256  ;;  %p799_p7 = scmp.lt.s32.totalorder %s561_s5, %s561_s5 }
  0x42   :  { %p795_p6 = scmp.ne.s32.totalorder %s561_s5, %s794_s21  ;;  %p800_p8 = scmp.lt.s32.totalorder %s794_s21, %s794_s21 }
  0x43   :  { %313 = vmatpush1.bf16.msra.mxu1 %v688_v12  ;;  %625 = vmatpush3.bf16.msra.mxu0 %v689_v13 }
  0x44   :  { %314 = vmatprep.subr.bf16.mxu1 %v690_v14  ;;  %626 = vmatprep.subr.bf16.mxu0 %v830_v0  ;;  %p801_p9 = por %p800_p8, %p799_p7 }
  0x46   :  { %p802_p10 = pnand %p801_p9, %p795_p6 }
  0x47   :  { %315 = vmatpush1.bf16.msra.mxu1 %v692_v15  ;;  %627 = vmatpush3.bf16.msra.mxu0 %v693_v16 }
  0x48   :  { %316 = vmatprep.subr.bf16.mxu1 %v694_v17  ;;  %628 = vmatprep.subr.bf16.mxu0 %v830_v0 }
  0x4b   :  { %317 = vmatpush1.bf16.msra.mxu1 %v696_v18  ;;  %629 = vmatpush3.bf16.msra.mxu0 %v697_v19 }
  0x4c   :  { %318 = vmatprep.subr.bf16.mxu1 %v698_v20  ;;  %630 = vmatprep.subr.bf16.mxu0 %v830_v0 }
  0x4f   :  { %319 = vmatpush1.bf16.msra.mxu1 %v700_v21  ;;  %631 = vmatpush3.bf16.msra.mxu0 %v701_v22 }
  0x50   :  { %320 = vmatprep.subr.bf16.mxu1 %v702_v23  ;;  %632 = vmatprep.subr.bf16.mxu0 %v830_v0 }
  0x53   :  { %321 = vmatpush1.bf16.msra.mxu1 %v704_v24  ;;  %633 = vmatpush3.bf16.msra.mxu0 %v705_v27 }
  0x54   :  { %644 = vmatprep.subr.bf16.mxu1 %v830_v0  ;;  %638 = vmatprep.subr.bf16.mxu0 %v830_v0 }
  0x56   :  { %339 = vmatmul.mubr.bf16.vlgmr.msra.gmra.mxu1 %v85_v30  ;;  %635 = vmatmul.mubr.bf16.vlgmr.msra.gmra.mxu0 %v84_v31 }
  0x57   :  { %646 = vmatprep.mubr.msk.bf16.mxu1 %vm832_vm0, %v830_v0  ;;  %640 = vmatprep.mubr.msk.bf16.mxu0 %vm832_vm0, %v830_v0 }
 0x116   :  { %v340_v38 = vpop.f32.mrf.mxu1  ;;  %v191_v42 = vpop.f32.mrf.mxu0 }
 0x117   :  { %v341_v40 = vadd.f32 %v340_v38, %v219_v37  ;;  %v192_v46 = vadd.f32 %v574_v41, %v191_v42 }
 0x118   :  { %v342_v43 = vpop.f32.mrf.mxu1  ;;  %v636_v45 = vpop.f32.mrf.mxu0 }
 0x119   :  { %v351_v44 = vpack.c.bf16 %v341_v40, %v341_v40  ;;  %v343_v47 = vadd.f32 %v342_v43, %v223_v39  ;;  %v349_v54 = vpack.c.bf16 %v192_v46, %v192_v46 }
 0x11a   :  { %v344_v48 = vpop.f32.mrf.mxu1  ;;  %v194_v50 = vpop.f32.mrf.mxu0 }
 0x11b   :  { %v345_v49 = vadd.f32 %v344_v48, %v219_v37  ;;  %639 = vmatpush3.bf16.xpose.msra.mxu0 %v351_v44  ;;  %v353_v55 = vpack.c.bf16 %v343_v47, %v343_v47  ;;  %v195_v57 = vadd.f32 %v574_v41, %v194_v50 }
 0x11c   :  { %v346_v51 = vpop.f32.mrf.mxu1  ;;  %650 = vmatprep.subr.bf16.mxu0 %v830_v0  ;;  %v637_v53 = vpop.f32.mrf.mxu0 }
 0x11d   :  { %v352_v52 = vpack.c.bf16 %v345_v49, %v345_v49  ;;  %v347_v56 = vadd.f32 %v346_v51, %v223_v39  ;;  %v465_v58 = vsel %vm463_vm1, %v353_v55, 0  ;;  %v350_v60 = vpack.c.bf16 %v195_v57, %v195_v57 }
 0x11f   :  { %645 = vmatpush3.bf16.xpose.msra.mxu1 %v352_v52  ;;  %v354_v59 = vpack.c.bf16 %v347_v56, %v347_v56 }
 0x120   :  { %656 = vmatprep.subr.bf16.mxu1 %v830_v0 }
 0x121   :  { %v511_v61 = vsel %vm463_vm1, %v354_v59, 0 }
 0x122   :  { %641 = vmatmul.mubr.bf16.vlgmr.msra.gmra.mxu0 %v349_v54 }
 0x123   :  { %651 = vmatpush3.bf16.msra.mxu0 %v465_v58  ;;  %652 = vmatprep.mubr.msk.bf16.mxu0 %vm832_vm0, %v830_v0 }
 0x126   :  { %647 = vmatmul.mubr.bf16.vlgmr.msra.gmra.mxu1 %v350_v60 }
 0x127   :  { %657 = vmatpush3.bf16.msra.mxu1 %v511_v61  ;;  %658 = vmatprep.mubr.msk.bf16.mxu1 %vm832_vm0, %v830_v0 }
 0x1e2   :  { %v389_v62 = vpop.f32.mrf.mxu0 }
 0x1e3   :  { %v436_v63 = vsel %vm435_vm2, %v389_v62, -inf }
 0x1e4   :  { %437 = vmax.xlane.f32.xlu0 %v436_v63  ;;  %v642_v1 = vpop.f32.mrf.mxu0 }
 0x1e6   :  { %v392_v2 = vpop.f32.mrf.mxu0  ;;  %v429_v3 = vpop.f32.mrf.mxu1 }
 0x1e7   :  { %v439_v4 = vsel %vm435_vm2, %v429_v3, -inf }
 0x1e8   :  { %v648_v5 = vpop.f32.mrf.mxu1  ;;  %440 = vmax.xlane.f32.xlu0 %v439_v4  ;;  %v643_v6 = vpop.f32.mrf.mxu0 }
 0x1ea   :  { %v432_v7 = vpop.f32.mrf.mxu1 }
 0x1ec   :  { %v649_v8 = vpop.f32.mrf.mxu1 }
 0x26d   :  { %v438_v9 = vpop.xlane.xlu0 %437 }
 0x26e   :  { %v442_v10 = vsub.f32 %v389_v62, %v438_v9 }
 0x270   :  { %v444_v11 = vmul.f32 1.442695, %v442_v10 }
 0x271   :  { %v441_v12 = vpop.xlane.xlu0 %440 }
 0x272   :  { %706 = vpow2.f32 %v444_v11  ;;  %v443_v0 = vsub.f32 %v429_v3, %v441_v12 }
 0x274   :  { %v446_v13 = vmul.f32 1.442695, %v443_v0 }
 0x276   :  { %708 = vpow2.f32 %v446_v13 }
 0x27f   :  { %v707_v14 = vpop.eup %706 }
 0x280   :  { %v448_v15 = vsel %vm435_vm2, %v707_v14, 0.0 }
 0x281   :  { %449 = vadd.xlane.f32.xlu1 %v448_v15 }
 0x283   :  { %v709_v16 = vpop.eup %708 }
 0x284   :  { %v451_v17 = vsel %vm435_vm2, %v709_v16, 0.0 }
 0x285   :  { %452 = vadd.xlane.f32.xlu1 %v451_v17 }
 0x30a   :  { %v450_v18 = vpop.xlane.xlu1 %449 }
 0x30b   :  { %710 = vrcp.f32 %v450_v18 }
 0x30e   :  { %v453_v19 = vpop.xlane.xlu1 %452 }
 0x30f   :  { %712 = vrcp.f32 %v453_v19 }
 0x318   :  { %v711_v20 = vpop.eup %710 }
 0x319   :  { %v456_v21 = vmul.f32 %v711_v20, %v707_v14 }
 0x31b   :  { %v458_v22 = vpack.c.bf16 %v456_v21, %v456_v21 }
 0x31c   :  { %v713_v23 = vpop.eup %712 }
 0x31d   :  { %653 = vmatmul.mubr.msk.bf16.vlgmr.msra.gmra.mxu0 %vm435_vm2, %v458_v22  ;;  %v457_v24 = vmul.f32 %v713_v23, %v709_v16 }
 0x31f   :  { %v459_v25 = vpack.c.bf16 %v457_v24, %v457_v24 }
 0x321   :  { %659 = vmatmul.mubr.msk.bf16.vlgmr.msra.gmra.mxu1 %vm435_vm2, %v459_v25 }
 0x3dd   :  { %v501_v26 = vpop.f32.mrf.mxu0 }
 0x3de   :  { %553 = vst [vmem:[#allocation10] sm:$0xff] %v501_v26 }
 0x3df   :  { %v654_v27 = vpop.f32.mrf.mxu0 }
 0x3e1   :  { %v504_v28 = vpop.f32.mrf.mxu0  ;;  %v547_v29 = vpop.f32.mrf.mxu1 }
 0x3e2   :  { %554 = vst [vmem:[#allocation10 + $0x8] sm:$0xff] %v547_v29 }
 0x3e3   :  { %v655_v30 = vpop.f32.mrf.mxu0  ;;  %v660_v31 = vpop.f32.mrf.mxu1 }
 0x3e4   :  { %805 = shalt.err (!%p802_p10)
}
 0x3e5   :  { %566 = dma.vmem_to_hbm [thread:$0]  %s561_s5, 256, %s936_s6, [#allocation4], %s824_s26, %s824_s26, %s825_s27   ;;  %v550_v32 = vpop.f32.mrf.mxu1 }
 0x3e7   :  { %v661_v33 = vpop.f32.mrf.mxu1 }
 0x3e8   :  { %820 = dma.done.wait [#allocation4], 256  }
 0x3e9   :  { %821 = vsyncadd [#allocation4], 4294967040 }
 0x3ea   :  { %570 = vsyncpa [#allocation3], 1 }
 0x3eb   :  { %571 = vsyncpa [#allocation6], 1 }
 0x3ec   :  { %572 = vsyncpa [#allocation9], 1 }
 0x3ed   :  { %573 = vsyncpa [#allocation4], 1 }

// kernel: tpu_custom_call.1
= control target key start
LH: loop header
LB: loop body
LE: loop exit
PB: predicated region body
PF: predicated region fallthrough
CT: control target
= control target key end

     0   :  { %11 = vsyncpa [#allocation3], 0  ;;  %s930_s0 = inlined_call_operand.hbm [shape: f32[2,8,128], index: 0, kind: input, shape index: {}]   ;;  %s931_s1 = inlined_call_operand.hbm [shape: f32[2,8,128], index: 1, kind: input, shape index: {}]   ;;  %s932_s2 = inlined_call_operand.hbm [shape: bf16[128,128], index: 2, kind: input, shape index: {}]   ;;  %s933_s3 = inlined_call_operand.vmem [shape: f32[1,128], index: 3, kind: input, shape index: {}]   ;;  %s934_s4 = inlined_call_operand.hbm [shape: bf16[128,256], index: 4, kind: input, shape index: {}]   ;;  %s935_s5 = inlined_call_operand.vmem [shape: f32[1,256], index: 5, kind: input, shape index: {}]   ;;  %s936_s6 = inlined_call_operand.hbm [shape: f32[2,8,128], index: 6, kind: output, shape index: {}]  }
   0x1   :  { %12 = vsyncpa [#allocation6], 0 }
   0x2   :  { %13 = vsyncpa [#allocation9], 0 }
   0x3   :  { %14 = vsyncpa [#allocation4], 0  ;;  %s822_s21 = smov [#allocation5]   ;;  %s823_s23 = smov [#allocation2]  }
   0x4   :  { %s32_s22 = sshll.u32 %s822_s21, 4  ;;  %s20_s24 = sshll.u32 %s823_s23, 4  ;;  %s33_s22 = int_to_ptr.vmem [resolvable:$true] %s32_s22  ;;  %s21_s24 = int_to_ptr.vmem [resolvable:$true] %s20_s24 }
   0x5   :  { %s722_s25 = scalar_lea.vmem %s33_s22, 256  ;;  %p727_p1 = scmp.lt.s32.totalorder %s33_s22, %s33_s22 }
   0x6   :  { %p723_p0 = scmp.ne.s32.totalorder %s33_s22, %s722_s25  ;;  %p728_p2 = scmp.lt.s32.totalorder %s722_s25, %s722_s25 }
   0x8   :  { %p729_p3 = por %p728_p2, %p727_p1 }
   0xa   :  { %p730_p4 = pnand %p729_p3, %p723_p0 }
   0xc   :  { %733 = shalt.err (!%p730_p4)
}
   0xd   :  { %s824_s26 = smov 128   ;;  %s825_s27 = smov 8  }
   0xe   :  { %38 = dma.hbm_to_vmem [thread:$0]  %s931_s1, 256, %s33_s22, [#allocation6], %s824_s26, %s824_s26, %s825_s27  }
   0xf   :  { %s742_s30 = scalar_lea.vmem %s21_s24, 256  ;;  %p747_p6 = scmp.lt.s32.totalorder %s21_s24, %s21_s24 }
  0x10   :  { %p743_p5 = scmp.ne.s32.totalorder %s21_s24, %s742_s30  ;;  %p748_p7 = scmp.lt.s32.totalorder %s742_s30, %s742_s30 }
  0x12   :  { %p749_p8 = por %p748_p7, %p747_p6 }
  0x14   :  { %p750_p9 = pnand %p749_p8, %p743_p5 }
  0x16   :  { %753 = shalt.err (!%p750_p9)
}
  0x17   :  { %26 = dma.hbm_to_vmem [thread:$0]  %s930_s0, 256, %s21_s24, [#allocation3], %s824_s26, %s824_s26, %s825_s27  }
  0x18   :  { %s826_s9 = smov [#allocation7]  }
  0x19   :  { %s44_s10 = sshll.u32 %s826_s9, 4  ;;  %s45_s10 = int_to_ptr.vmem [resolvable:$true] %s44_s10 }
  0x1a   :  { %s762_s11 = scalar_lea.vmem %s45_s10, 1024  ;;  %p767_p11 = scmp.lt.s32.totalorder %s45_s10, %s45_s10 }
  0x1b   :  { %p763_p10 = scmp.ne.s32.totalorder %s45_s10, %s762_s11  ;;  %p768_p12 = scmp.lt.s32.totalorder %s762_s11, %s762_s11 }
  0x1d   :  { %p769_p13 = por %p768_p12, %p767_p11 }
  0x1f   :  { %p770_p0 = pnand %p769_p13, %p763_p10 }
  0x21   :  { %773 = shalt.err (!%p770_p0)
}
  0x22   :  { %s827_s1 = smov 64   ;;  %s828_s12 = smov 4  }
  0x23   :  { %50 = dma.hbm_to_vmem [thread:$0]  %s932_s2, 1024, %s45_s10, [#allocation6], %s827_s1, %s827_s1, %s828_s12  }
  0x24   :  { %s829_s15 = smov [#allocation8]  }
  0x25   :  { %s58_s16 = sshll.u32 %s829_s15, 4  ;;  %s59_s16 = int_to_ptr.vmem [resolvable:$true] %s58_s16 }
  0x26   :  { %s782_s0 = scalar_lea.vmem %s59_s16, 2048  ;;  %p787_p2 = scmp.lt.s32.totalorder %s59_s16, %s59_s16 }
  0x27   :  { %p783_p1 = scmp.ne.s32.totalorder %s59_s16, %s782_s0  ;;  %p788_p3 = scmp.lt.s32.totalorder %s782_s0, %s782_s0 }
  0x29   :  { %p789_p4 = por %p788_p3, %p787_p2 }
  0x2b   :  { %p790_p5 = pnand %p789_p4, %p783_p1 }
  0x2d   :  { %793 = shalt.err (!%p790_p5)
}
  0x2e   :  { %64 = dma.hbm_to_vmem [thread:$0]  %s934_s4, 2048, %s59_s16, [#allocation9], %s824_s26, %s824_s26, %s825_s27  }
  0x2f   :  { %814 = dma.done.wait [#allocation3], 256  }
  0x30   :  { %815 = vsyncadd [#allocation3], 4294967040 }
  0x31   :  { %816 = dma.done.wait [#allocation6], 1280  }
  0x32   :  { %817 = vsyncadd [#allocation6], 4294966016 }
  0x33   :  { %818 = dma.done.wait [#allocation9], 2048  }
  0x34   :  { %819 = vsyncadd [#allocation9], 4294965248  ;;  %v830_v0 = vmov 0.0   ;;  %v831_v1 = vmov 0   ;;  %vm832_vm0 = vmmov 0   ;;  %v677_v4 = vld [vmem:[#allocation7 + $0x38] sm:$0xff]   ;;  %v216_v32 = vlaneseq }
  0x35   :  { %618 = vmatprep.subr.bf16.mxu0 %v830_v0  ;;  %338 = vmatprep.mubr.bf16.mxu1 %v831_v1  ;;  %v674_v2 = vld [vmem:[#allocation8 + $0x74] ss:$8 sps:$4 sm:$0xff]   ;;  %v676_v3 = vld [vmem:[#allocation8 + $0x70] ss:$8 sps:$4 sm:$0xff]   ;;  %v678_v5 = vld [vmem:[#allocation8 + $0x64] ss:$8 sps:$4 sm:$0xff]  }
  0x36   :  { %634 = vmatprep.mubr.msk.bf16.mxu0 %vm832_vm0, %v830_v0  ;;  %306 = vmatprep.subr.bf16.mxu1 %v674_v2  ;;  %v680_v6 = vld [vmem:[#allocation8 + $0x60] ss:$8 sps:$4 sm:$0xff]   ;;  %v681_v7 = vld [vmem:[#allocation7 + $0x30] sm:$0xff]   ;;  %v686_v11 = vld [vmem:[#allocation8 + $0x44] ss:$8 sps:$4 sm:$0xff]   ;;  %v217_v33 = vshrl.u32 %v216_v32, 7 }
  0x37   :  { %307 = vmatpush1.bf16.msra.mxu1 %v676_v3  ;;  %619 = vmatpush3.bf16.msra.mxu0 %v677_v4  ;;  %v682_v8 = vld [vmem:[#allocation8 + $0x54] ss:$8 sps:$4 sm:$0xff]   ;;  %v684_v9 = vld [vmem:[#allocation8 + $0x50] ss:$8 sps:$4 sm:$0xff]   ;;  %v685_v10 = vld [vmem:[#allocation7 + $0x28] sm:$0xff]   ;;  %vm463_vm1 = vcmask 1043456  }
  0x38   :  { %308 = vmatprep.subr.bf16.mxu1 %v678_v5  ;;  %620 = vmatprep.subr.bf16.mxu0 %v830_v0  ;;  %v688_v12 = vld [vmem:[#allocation8 + $0x40] ss:$8 sps:$4 sm:$0xff]   ;;  %v690_v14 = vld [vmem:[#allocation8 + $0x34] ss:$8 sps:$4 sm:$0xff]   ;;  %v692_v15 = vld [vmem:[#allocation8 + $0x30] ss:$8 sps:$4 sm:$0xff]  }
  0x39   :  { %v689_v13 = vld [vmem:[#allocation7 + $0x20] sm:$0xff]   ;;  %v693_v16 = vld [vmem:[#allocation7 + $0x18] sm:$0xff]   ;;  %v697_v19 = vld [vmem:[#allocation7 + $0x10] sm:$0xff]   ;;  %v218_v34 = vsub.s32 0, %v217_v33  ;;  %v222_v36 = vsub.s32 1, %v217_v33  ;;  %vm435_vm2 = vcmask 64512  }
  0x3a   :  { %v694_v17 = vld [vmem:[#allocation8 + $0x24] ss:$8 sps:$4 sm:$0xff]   ;;  %v696_v18 = vld [vmem:[#allocation8 + $0x20] ss:$8 sps:$4 sm:$0xff]   ;;  %v698_v20 = vld [vmem:[#allocation8 + $0x14] ss:$8 sps:$4 sm:$0xff]  }
  0x3b   :  { %309 = vmatpush1.bf16.msra.mxu1 %v680_v6  ;;  %621 = vmatpush3.bf16.msra.mxu0 %v681_v7  ;;  %v700_v21 = vld [vmem:[#allocation8 + $0x10] ss:$8 sps:$4 sm:$0xff]   ;;  %v701_v22 = vld [vmem:[#allocation7 + $0x8] sm:$0xff]   ;;  %v705_v27 = vld [vmem:[#allocation7] sm:$0xff]  }
  0x3c   :  { %310 = vmatprep.subr.bf16.mxu1 %v682_v8  ;;  %622 = vmatprep.subr.bf16.mxu0 %v830_v0  ;;  %v702_v23 = vld [vmem:[#allocation8 + $0x4] ss:$8 sps:$4 sm:$0xff]   ;;  %v704_v24 = vld [vmem:[#allocation8] ss:$8 sps:$4 sm:$0xff]   ;;  %v82_v25 = vld [vmem:[#allocation5] sm:$0xff] }
  0x3d   :  { %v83_v26 = vld [vmem:[#allocation5 + $0x8] sm:$0xff]  ;;  %v80_v28 = vld [vmem:[#allocation2] sm:$0xff]  ;;  %v81_v29 = vld [vmem:[#allocation2 + $0x8] sm:$0xff] }
  0x3e   :  { %v85_v30 = vpack.c.bf16 %v83_v26, %v82_v25  ;;  %v84_v31 = vpack.c.bf16 %v81_v29, %v80_v28  ;;  %v214_v35 = vld [vmem:[%s935_s5] sm:$0x3] }
  0x3f   :  { %311 = vmatpush1.bf16.msra.mxu1 %v684_v9  ;;  %623 = vmatpush3.bf16.msra.mxu0 %v685_v10  ;;  %v219_v37 = vrot.slane %v214_v35, %v218_v34  ;;  %v223_v39 = vrot.slane %v214_v35, %v222_v36  ;;  %v574_v41 = vld [vmem:[%s933_s3] ss:$0 sm:$0xff]  ;;  %s833_s3 = smov [#allocation10]  }
  0x40   :  { %312 = vmatprep.subr.bf16.mxu1 %v686_v11  ;;  %624 = vmatprep.subr.bf16.mxu0 %v830_v0  ;;  %s560_s5 = sshll.u32 %s833_s3, 4  ;;  %s561_s5 = int_to_ptr.vmem [resolvable:$true] %s560_s5 }
  0x41   :  { %s794_s21 = scalar_lea.vmem %s561_s5, 256  ;;  %p799_p7 = scmp.lt.s32.totalorder %s561_s5, %s561_s5 }
  0x42   :  { %p795_p6 = scmp.ne.s32.totalorder %s561_s5, %s794_s21  ;;  %p800_p8 = scmp.lt.s32.totalorder %s794_s21, %s794_s21 }
  0x43   :  { %313 = vmatpush1.bf16.msra.mxu1 %v688_v12  ;;  %625 = vmatpush3.bf16.msra.mxu0 %v689_v13 }
  0x44   :  { %314 = vmatprep.subr.bf16.mxu1 %v690_v14  ;;  %626 = vmatprep.subr.bf16.mxu0 %v830_v0  ;;  %p801_p9 = por %p800_p8, %p799_p7 }
  0x46   :  { %p802_p10 = pnand %p801_p9, %p795_p6 }
  0x47   :  { %315 = vmatpush1.bf16.msra.mxu1 %v692_v15  ;;  %627 = vmatpush3.bf16.msra.mxu0 %v693_v16 }
  0x48   :  { %316 = vmatprep.subr.bf16.mxu1 %v694_v17  ;;  %628 = vmatprep.subr.bf16.mxu0 %v830_v0 }
  0x4b   :  { %317 = vmatpush1.bf16.msra.mxu1 %v696_v18  ;;  %629 = vmatpush3.bf16.msra.mxu0 %v697_v19 }
  0x4c   :  { %318 = vmatprep.subr.bf16.mxu1 %v698_v20  ;;  %630 = vmatprep.subr.bf16.mxu0 %v830_v0 }
  0x4f   :  { %319 = vmatpush1.bf16.msra.mxu1 %v700_v21  ;;  %631 = vmatpush3.bf16.msra.mxu0 %v701_v22 }
  0x50   :  { %320 = vmatprep.subr.bf16.mxu1 %v702_v23  ;;  %632 = vmatprep.subr.bf16.mxu0 %v830_v0 }
  0x53   :  { %321 = vmatpush1.bf16.msra.mxu1 %v704_v24  ;;  %633 = vmatpush3.bf16.msra.mxu0 %v705_v27 }
  0x54   :  { %644 = vmatprep.subr.bf16.mxu1 %v830_v0  ;;  %638 = vmatprep.subr.bf16.mxu0 %v830_v0 }
  0x56   :  { %339 = vmatmul.mubr.bf16.vlgmr.msra.gmra.mxu1 %v85_v30  ;;  %635 = vmatmul.mubr.bf16.vlgmr.msra.gmra.mxu0 %v84_v31 }
  0x57   :  { %646 = vmatprep.mubr.msk.bf16.mxu1 %vm832_vm0, %v830_v0  ;;  %640 = vmatprep.mubr.msk.bf16.mxu0 %vm832_vm0, %v830_v0 }
 0x116   :  { %v340_v38 = vpop.f32.mrf.mxu1  ;;  %v191_v42 = vpop.f32.mrf.mxu0 }
 0x117   :  { %v341_v40 = vadd.f32 %v340_v38, %v219_v37  ;;  %v192_v46 = vadd.f32 %v574_v41, %v191_v42 }
 0x118   :  { %v342_v43 = vpop.f32.mrf.mxu1  ;;  %v636_v45 = vpop.f32.mrf.mxu0 }
 0x119   :  { %v351_v44 = vpack.c.bf16 %v341_v40, %v341_v40  ;;  %v343_v47 = vadd.f32 %v342_v43, %v223_v39  ;;  %v349_v54 = vpack.c.bf16 %v192_v46, %v192_v46 }
 0x11a   :  { %v344_v48 = vpop.f32.mrf.mxu1  ;;  %v194_v50 = vpop.f32.mrf.mxu0 }
 0x11b   :  { %v345_v49 = vadd.f32 %v344_v48, %v219_v37  ;;  %639 = vmatpush3.bf16.xpose.msra.mxu0 %v351_v44  ;;  %v353_v55 = vpack.c.bf16 %v343_v47, %v343_v47  ;;  %v195_v57 = vadd.f32 %v574_v41, %v194_v50 }
 0x11c   :  { %v346_v51 = vpop.f32.mrf.mxu1  ;;  %650 = vmatprep.subr.bf16.mxu0 %v830_v0  ;;  %v637_v53 = vpop.f32.mrf.mxu0 }
 0x11d   :  { %v352_v52 = vpack.c.bf16 %v345_v49, %v345_v49  ;;  %v347_v56 = vadd.f32 %v346_v51, %v223_v39  ;;  %v465_v58 = vsel %vm463_vm1, %v353_v55, 0  ;;  %v350_v60 = vpack.c.bf16 %v195_v57, %v195_v57 }
 0x11f   :  { %645 = vmatpush3.bf16.xpose.msra.mxu1 %v352_v52  ;;  %v354_v59 = vpack.c.bf16 %v347_v56, %v347_v56 }
 0x120   :  { %656 = vmatprep.subr.bf16.mxu1 %v830_v0 }
 0x121   :  { %v511_v61 = vsel %vm463_vm1, %v354_v59, 0 }
 0x122   :  { %641 = vmatmul.mubr.bf16.vlgmr.msra.gmra.mxu0 %v349_v54 }
 0x123   :  { %651 = vmatpush3.bf16.msra.mxu0 %v465_v58  ;;  %652 = vmatprep.mubr.msk.bf16.mxu0 %vm832_vm0, %v830_v0 }
 0x126   :  { %647 = vmatmul.mubr.bf16.vlgmr.msra.gmra.mxu1 %v350_v60 }
 0x127   :  { %657 = vmatpush3.bf16.msra.mxu1 %v511_v61  ;;  %658 = vmatprep.mubr.msk.bf16.mxu1 %vm832_vm0, %v830_v0 }
 0x1e2   :  { %v389_v62 = vpop.f32.mrf.mxu0 }
 0x1e3   :  { %v436_v63 = vsel %vm435_vm2, %v389_v62, -inf }
 0x1e4   :  { %437 = vmax.xlane.f32.xlu0 %v436_v63  ;;  %v642_v1 = vpop.f32.mrf.mxu0 }
 0x1e6   :  { %v392_v2 = vpop.f32.mrf.mxu0  ;;  %v429_v3 = vpop.f32.mrf.mxu1 }
 0x1e7   :  { %v439_v4 = vsel %vm435_vm2, %v429_v3, -inf }
 0x1e8   :  { %v648_v5 = vpop.f32.mrf.mxu1  ;;  %440 = vmax.xlane.f32.xlu0 %v439_v4  ;;  %v643_v6 = vpop.f32.mrf.mxu0 }
 0x1ea   :  { %v432_v7 = vpop.f32.mrf.mxu1 }
 0x1ec   :  { %v649_v8 = vpop.f32.mrf.mxu1 }
 0x26d   :  { %v438_v9 = vpop.xlane.xlu0 %437 }
 0x26e   :  { %v442_v10 = vsub.f32 %v389_v62, %v438_v9 }
 0x270   :  { %v444_v11 = vmul.f32 1.442695, %v442_v10 }
 0x271   :  { %v441_v12 = vpop.xlane.xlu0 %440 }
 0x272   :  { %706 = vpow2.f32 %v444_v11  ;;  %v443_v0 = vsub.f32 %v429_v3, %v441_v12 }
 0x274   :  { %v446_v13 = vmul.f32 1.442695, %v443_v0 }
 0x276   :  { %708 = vpow2.f32 %v446_v13 }
 0x27f   :  { %v707_v14 = vpop.eup %706 }
 0x280   :  { %v448_v15 = vsel %vm435_vm2, %v707_v14, 0.0 }
 0x281   :  { %449 = vadd.xlane.f32.xlu1 %v448_v15 }
 0x283   :  { %v709_v16 = vpop.eup %708 }
 0x284   :  { %v451_v17 = vsel %vm435_vm2, %v709_v16, 0.0 }
 0x285   :  { %452 = vadd.xlane.f32.xlu1 %v451_v17 }
 0x30a   :  { %v450_v18 = vpop.xlane.xlu1 %449 }
 0x30b   :  { %710 = vrcp.f32 %v450_v18 }
 0x30e   :  { %v453_v19 = vpop.xlane.xlu1 %452 }
 0x30f   :  { %712 = vrcp.f32 %v453_v19 }
 0x318   :  { %v711_v20 = vpop.eup %710 }
 0x319   :  { %v456_v21 = vmul.f32 %v711_v20, %v707_v14 }
 0x31b   :  { %v458_v22 = vpack.c.bf16 %v456_v21, %v456_v21 }
 0x31c   :  { %v713_v23 = vpop.eup %712 }
 0x31d   :  { %653 = vmatmul.mubr.msk.bf16.vlgmr.msra.gmra.mxu0 %vm435_vm2, %v458_v22  ;;  %v457_v24 = vmul.f32 %v713_v23, %v709_v16 }
 0x31f   :  { %v459_v25 = vpack.c.bf16 %v457_v24, %v457_v24 }
 0x321   :  { %659 = vmatmul.mubr.msk.bf16.vlgmr.msra.gmra.mxu1 %vm435_vm2, %v459_v25 }
 0x3dd   :  { %v501_v26 = vpop.f32.mrf.mxu0 }
 0x3de   :  { %553 = vst [vmem:[#allocation10] sm:$0xff] %v501_v26 }
 0x3df   :  { %v654_v27 = vpop.f32.mrf.mxu0 }
 0x3e1   :  { %v504_v28 = vpop.f32.mrf.mxu0  ;;  %v547_v29 = vpop.f32.mrf.mxu1 }
 0x3e2   :  { %554 = vst [vmem:[#allocation10 + $0x8] sm:$0xff] %v547_v29 }
 0x3e3   :  { %v655_v30 = vpop.f32.mrf.mxu0  ;;  %v660_v31 = vpop.f32.mrf.mxu1 }
 0x3e4   :  { %805 = shalt.err (!%p802_p10)
}
 0x3e5   :  { %566 = dma.vmem_to_hbm [thread:$0]  %s561_s5, 256, %s936_s6, [#allocation4], %s824_s26, %s824_s26, %s825_s27   ;;  %v550_v32 = vpop.f32.mrf.mxu1 }
 0x3e7   :  { %v661_v33 = vpop.f32.mrf.mxu1 }
 0x3e8   :  { %820 = dma.done.wait [#allocation4], 256  }
 0x3e9   :  { %821 = vsyncadd [#allocation4], 4294967040 }
 0x3ea   :  { %570 = vsyncpa [#allocation3], 1 }
 0x3eb   :  { %571 = vsyncpa [#allocation6], 1 }
 0x3ec   :  { %572 = vsyncpa [#allocation9], 1 }
 0x3ed   :  { %573 = vsyncpa [#allocation4], 1 }

</bundles_post_ra>
